<compile_context>
chip_gen: v6e
topology: v6e:2x2x1
jax: 0.10.0
libtpu: 0.0.40
codegen_flags: <defaults>
</compile_context>

<pallas_src>
import functools

import jax
import jax.numpy as jnp
from jax.experimental import pallas as pl
from jax.experimental.pallas import tpu as pltpu

_LANE = 128
_SUBLANE = 8


def _round_up(x: int, m: int) -> int:
    return ((x + m - 1) // m) * m


def _activation_layer_kernel(x_ref, w_ref, bw_ref, o_ref, *, activation):
    # x_ref:  (TB, F_in)        bf16 batch tile (pipelined per grid step)
    # w_ref:  (F_in, F_out_pad) bf16 weight, VMEM-resident across grid steps
    # bw_ref: (1, F_out_pad)    f32 precomputed bias @ weight, VMEM-resident
    # o_ref:  (TB, F_out_pad)   f32 output tile (lane-dense, unmasked stores)
    acc = jnp.dot(x_ref[...], w_ref[...], preferred_element_type=jnp.float32)
    out = acc - bw_ref[...]  # (x - b) @ W == x @ W - (b @ W)
    if activation == "relu":      # ReLULayer epilogue
        out = jnp.maximum(out, 0.0)
    elif activation == "exu":     # ExULayer epilogue (exp(W) already applied in wrapper)
        out = jnp.clip(out, 0.0, 1.0)
    o_ref[...] = out.astype(o_ref.dtype)


def activation_layer(x, weight, bias, *, activation="none", block_batch=512):
    """NAM ActivationLayer hot path: (x - bias) @ W [+ fused subclass epilogue].

    activation:
      "none" -> shared linear hot path of the (abstract) base class
      "relu" -> ReLULayer:  relu((x - bias) @ weight)
      "exu"  -> ExULayer:   clip((x - bias) @ exp(weight), 0, 1)
    """
    B, F_in = x.shape
    F_in_w, F_out = weight.shape
    assert F_in == F_in_w and bias.shape == (F_in,)

    weight_f32 = weight.astype(jnp.float32)
    if activation == "exu":
        # ExULayer applies exp to the weight before the matmul; do it once on the
        # parameter (not per batch tile) and fold the bias through exp(W).
        weight_f32 = jnp.exp(weight_f32)

    # Lane-dense output: pad out_features to a multiple of 128 (zero weight columns);
    # padded columns are sliced off after the call.
    F_out_pad = _round_up(F_out, _LANE)

    # Batch tiling: tiles are multiples of 8 sublanes, capped at block_batch; the
    # batch is zero-padded so it divides evenly (padding sliced off afterwards).
    TB = min(block_batch, _round_up(B, _SUBLANE))
    B_pad = _round_up(B, TB)

    # Fold the bias once, in full f32 precision.
    bw = (bias.astype(jnp.float32) @ weight_f32).reshape(1, F_out)
    if F_out_pad != F_out:
        weight_f32 = jnp.pad(weight_f32, ((0, 0), (0, F_out_pad - F_out)))
        bw = jnp.pad(bw, ((0, 0), (0, F_out_pad - F_out)))
    if B_pad != B:
        x = jnp.pad(x, ((0, B_pad - B), (0, 0)))

    # bf16 operands feed the MXU at full rate on v6e/v7x; accumulation stays f32.
    x_bf16 = x.astype(jnp.bfloat16)
    w_bf16 = weight_f32.astype(jnp.bfloat16)

    grid = (B_pad // TB,)
    kernel = functools.partial(_activation_layer_kernel, activation=activation)

    # Per-step VMEM: 2*(TB*F_in*2 + TB*F_out_pad*4) + resident weight/bw — well under
    # the default scoped VMEM limit on v5e (16 MiB) / v6e / v7x (32 MiB) for TB<=512,
    # so no vmem_limit_bytes override is needed.
    # TODO(synk): for a full NAM, stack all per-feature nets on a leading axis and run
    # them in one pallas_call (extra grid axis) instead of one launch per feature net.
    out = pl.pallas_call(
        kernel,
        out_shape=jax.ShapeDtypeStruct((B_pad, F_out_pad), jnp.float32),
        grid=grid,
        in_specs=[
            pl.BlockSpec((TB, F_in), lambda i: (i, 0)),         # x: batch-tiled
            pl.BlockSpec((F_in, F_out_pad), lambda i: (0, 0)),  # weight: resident
            pl.BlockSpec((1, F_out_pad), lambda i: (0, 0)),     # bias@weight: resident
        ],
        out_specs=pl.BlockSpec((TB, F_out_pad), lambda i: (i, 0)),
        compiler_params=pltpu.CompilerParams(
            dimension_semantics=("parallel",),  # batch tiles are independent
        ),
    )(x_bf16, w_bf16, bw)

    return out[:B, :F_out]


if __name__ == "__main__":
    # Small shapes consistent with the module: x: (batch, in_features)
    batch, in_features, out_features = 8, 32, 64

    key = jax.random.PRNGKey(0)
    kx, kw, kb = jax.random.split(key, 3)

    x = jax.random.normal(kx, (batch, in_features), dtype=jnp.float32)
    # Deterministic parameter init (torch.empty in __init__ is uninitialized;
    # we pick a deterministic normal init here).
    weight = jax.random.normal(kw, (in_features, out_features), dtype=jnp.float32) * 0.5
    bias = jax.random.normal(kb, (in_features,), dtype=jnp.float32) * 0.5

    # Base (abstract) contract: shared linear hot path.
    out = activation_layer(x, weight, bias)
    out = jax.block_until_ready(out)
    ref = (x - bias[None, :]) @ weight
    assert out.shape == (batch, out_features)
    # bf16 matmul inputs (f32 accumulate) => loose-but-safe tolerance vs. f32 reference.
    assert jnp.allclose(out, ref, atol=5e-2, rtol=5e-2)

    # Fused ReLU epilogue (ReLULayer subclass) + uneven batch / multi-step grid path.
    x2 = jax.random.normal(jax.random.PRNGKey(1), (13, in_features), dtype=jnp.float32)
    out2 = activation_layer(x2, weight, bias, activation="relu", block_batch=8)
    out2 = jax.block_until_ready(out2)
    ref2 = jnp.maximum((x2 - bias[None, :]) @ weight, 0.0)
    assert out2.shape == (13, out_features)
    assert jnp.allclose(out2, ref2, atol=5e-2, rtol=5e-2)

    # Fused ExU epilogue (ExULayer subclass): exp(weight) applied once in the wrapper,
    # clip(., 0, 1) fused in the kernel.
    out3 = activation_layer(x, weight, bias, activation="exu")
    out3 = jax.block_until_ready(out3)
    ref3 = jnp.clip((x - bias[None, :]) @ jnp.exp(weight), 0.0, 1.0)
    assert out3.shape == (batch, out_features)
    assert jnp.allclose(out3, ref3, atol=5e-2, rtol=5e-2)

    print("KERNEL_OK")
</pallas_src>

<mosaic_0001>
module attributes {stable_mosaic.version = 11 : i64} {
  func.func @_activation_layer_kernel(%arg0: i32, %arg1: memref<8x32xbf16, #tpu.memory_space<vmem>>, %arg2: memref<32x128xbf16, #tpu.memory_space<vmem>>, %arg3: memref<1x128xf32, #tpu.memory_space<vmem>>, %arg4: memref<8x128xf32, #tpu.memory_space<vmem>>) attributes {dimension_semantics = [#tpu.dimension_semantics<parallel>], iteration_bounds = array<i64: 1>, scalar_prefetch = 0 : i64, scratch_operands = 0 : i64, tpu.core_type = #tpu.core_type<tc>, window_params = [{transform_indices = @transform_0, window_bounds = array<i64: 8, 32>}, {pipeline_mode = #tpu.pipeline_mode<synchronous>, transform_indices = @transform_1, window_bounds = array<i64: 32, 128>}, {pipeline_mode = #tpu.pipeline_mode<synchronous>, transform_indices = @transform_2, window_bounds = array<i64: 1, 128>}, {transform_indices = @transform_3, window_bounds = array<i64: 8, 128>}]} {
    %c0 = arith.constant 0 : index
    %c0_0 = arith.constant 0 : index
    %0 = vector.load %arg1[%c0, %c0_0] : memref<8x32xbf16, #tpu.memory_space<vmem>>, vector<8x32xbf16>
    %c0_1 = arith.constant 0 : index
    %c0_2 = arith.constant 0 : index
    %1 = vector.load %arg2[%c0_1, %c0_2] : memref<32x128xbf16, #tpu.memory_space<vmem>>, vector<32x128xbf16>
    %cst = arith.constant dense<0.000000e+00> : vector<8x128xf32>
    %2 = tpu.matmul %0, %1, %cst {dimension_numbers = #tpu.dot_dimension_numbers<[1], [0], [0], [1], [0, 0, 1, 1], [], []>} : vector<8x32xbf16>, vector<32x128xbf16>, vector<8x128xf32> -> vector<8x128xf32>
    %c0_3 = arith.constant 0 : index
    %c0_4 = arith.constant 0 : index
    %3 = vector.load %arg3[%c0_3, %c0_4] : memref<1x128xf32, #tpu.memory_space<vmem>>, vector<1x128xf32>
    %4 = vector.broadcast %3 : vector<1x128xf32> to vector<8x128xf32>
    %5 = arith.subf %2, %4 : vector<8x128xf32>
    %c0_5 = arith.constant 0 : index
    %c0_6 = arith.constant 0 : index
    %6 = vector.load %arg4[%c0_5, %c0_6] : memref<8x128xf32, #tpu.memory_space<vmem>>, vector<8x128xf32>
    tpu.vector_store %arg4[%c0_5, %c0_6], %5 {strides = array<i32>} : memref<8x128xf32, #tpu.memory_space<vmem>>, vector<8x128xf32>,
    return
  }
  func.func @transform_0(%arg0: i32) -> (i32, i32) {
    %c0_i32 = arith.constant 0 : i32
    %c0_i32_0 = arith.constant 0 : i32
    return %arg0, %c0_i32 : i32, i32
  }
  func.func @transform_1(%arg0: i32) -> (i32, i32) {
    %c0_i32 = arith.constant 0 : i32
    %c0_i32_0 = arith.constant 0 : i32
    %c0_i32_1 = arith.constant 0 : i32
    return %c0_i32, %c0_i32_0 : i32, i32
  }
  func.func @transform_2(%arg0: i32) -> (i32, i32) {
    %c0_i32 = arith.constant 0 : i32
    %c0_i32_0 = arith.constant 0 : i32
    %c0_i32_1 = arith.constant 0 : i32
    return %c0_i32, %c0_i32_0 : i32, i32
  }
  func.func @transform_3(%arg0: i32) -> (i32, i32) {
    %c0_i32 = arith.constant 0 : i32
    %c0_i32_0 = arith.constant 0 : i32
    return %arg0, %c0_i32 : i32, i32
  }
}

</mosaic_0001>

<bundles_post_ra>
// kernel: tpu_custom_call.1
= control target key start
LH: loop header
LB: loop body
LE: loop exit
PB: predicated region body
PF: predicated region fallthrough
CT: control target
= control target key end

     0   :  { %8 = vsyncpa [#allocation3], 0  ;;  %s257_s0 = inlined_call_operand.hbm [shape: bf16[8,32], index: 0, kind: input, shape index: {}]   ;;  %s258_s1 = inlined_call_operand.hbm [shape: bf16[32,128], index: 1, kind: input, shape index: {}]   ;;  %s259_s2 = inlined_call_operand.vmem [shape: f32[1,128], index: 2, kind: input, shape index: {}]   ;;  %s260_s3 = inlined_call_operand.hbm [shape: f32[8,128], index: 3, kind: output, shape index: {}]  }
   0x1   :  { %9 = vsyncpa [#allocation6], 0 }
   0x2   :  { %10 = vsyncpa [#allocation4], 0  ;;  %s218_s12 = smov [#allocation2]   ;;  %s219_s14 = smov [#allocation5]  }
   0x3   :  { %s17_s13 = sshll.u32 %s218_s12, 4  ;;  %s26_s15 = sshll.u32 %s219_s14, 4  ;;  %s18_s13 = int_to_ptr.vmem [resolvable:$true] %s17_s13  ;;  %s27_s15 = int_to_ptr.vmem [resolvable:$true] %s26_s15 }
   0x4   :  { %s160_s16 = scalar_lea.vmem %s18_s13, 64  ;;  %p165_p1 = scmp.lt.s32.totalorder %s18_s13, %s18_s13 }
   0x5   :  { %p161_p0 = scmp.ne.s32.totalorder %s18_s13, %s160_s16  ;;  %p166_p2 = scmp.lt.s32.totalorder %s160_s16, %s160_s16 }
   0x7   :  { %p167_p3 = por %p166_p2, %p165_p1 }
   0x9   :  { %p168_p4 = pnand %p167_p3, %p161_p0 }
   0xb   :  { %171 = shalt.err (!%p168_p4)
}
   0xc   :  { %20 = dma.hbm_to_vmem [thread:$0]  %s257_s0, 64, %s18_s13, [#allocation3]  }
   0xd   :  { %s180_s19 = scalar_lea.vmem %s27_s15, 256  ;;  %p185_p6 = scmp.lt.s32.totalorder %s27_s15, %s27_s15 }
   0xe   :  { %p181_p5 = scmp.ne.s32.totalorder %s27_s15, %s180_s19  ;;  %p186_p7 = scmp.lt.s32.totalorder %s180_s19, %s180_s19 }
  0x10   :  { %p187_p8 = por %p186_p7, %p185_p6 }
  0x12   :  { %p188_p9 = pnand %p187_p8, %p181_p5 }
  0x14   :  { %191 = shalt.err (!%p188_p9)
}
  0x15   :  { %s220_s20 = smov 64   ;;  %s221_s21 = smov 4  }
  0x16   :  { %32 = dma.hbm_to_vmem [thread:$0]  %s258_s1, 256, %s27_s15, [#allocation6], %s220_s20, %s220_s20, %s221_s21  }
  0x17   :  { %212 = dma.done.wait [#allocation3], 64  }
  0x18   :  { %213 = vsyncadd [#allocation3], 4294967232 }
  0x19   :  { %214 = dma.done.wait [#allocation6], 256  }
  0x1a   :  { %215 = vsyncadd [#allocation6], 4294967040  ;;  %v222_v0 = vmov 0.0   ;;  %vm223_vm0 = vmmov 0   ;;  %v150_v1 = vld [vmem:[#allocation5 + $0x8] sm:$0xff]   ;;  %v151_v2 = vld [vmem:[#allocation5] sm:$0xff]  }
  0x1b   :  { %135 = vmatprep.subr.bf16.mxu0 %v222_v0  ;;  %139 = vmatprep.mubr.msk.bf16.mxu0 %vm223_vm0, %v222_v0  ;;  %v42_v3 = vld [vmem:[#allocation2] sm:$0xf]  ;;  %vm59_vm1 = vcmask 261120   ;;  %s224_s1 = smov [#allocation7]  }
  0x1c   :  { %136 = vmatpush3.bf16.msra.mxu0 %v150_v1  ;;  %v131_v4 = vld [vmem:[%s259_s2] ss:$0 sm:$0xff]  ;;  %s118_s25 = sshll.u32 %s224_s1, 4  ;;  %s119_s25 = int_to_ptr.vmem [resolvable:$true] %s118_s25 }
  0x1d   :  { %137 = vmatprep.subr.bf16.mxu0 %v222_v0  ;;  %s192_s26 = scalar_lea.vmem %s119_s25, 128  ;;  %p197_p11 = scmp.lt.s32.totalorder %s119_s25, %s119_s25 }
  0x1e   :  { %p193_p10 = scmp.ne.s32.totalorder %s119_s25, %s192_s26  ;;  %p198_p12 = scmp.lt.s32.totalorder %s192_s26, %s192_s26 }
  0x20   :  { %138 = vmatpush3.bf16.msra.mxu0 %v151_v2  ;;  %p199_p13 = por %p198_p12, %p197_p11 }
  0x22   :  { %p200_p0 = pnand %p199_p13, %p193_p10 }
  0x23   :  { %140 = vmatmul.mubr.msk.bf16.vlgmr.msra.gmra.mxu0 %vm59_vm1, %v42_v3 }
  0xe3   :  { %v97_v5 = vpop.f32.mrf.mxu0 }
  0xe4   :  { %v110_v6 = vsub.f32 %v97_v5, %v131_v4 }
  0xe5   :  { %v141_v7 = vpop.f32.mrf.mxu0 }
  0xe6   :  { %111 = vst [vmem:[#allocation7] sm:$0xff] %v110_v6 }
  0xe7   :  { %v100_v8 = vpop.f32.mrf.mxu0 }
  0xe8   :  { %203 = shalt.err (!%p200_p0)
}
  0xe9   :  { %121 = dma.vmem_to_hbm [thread:$0]  %s119_s25, 128, %s260_s3, [#allocation4]   ;;  %v142_v9 = vpop.f32.mrf.mxu0 }
  0xea   :  { %216 = dma.done.wait [#allocation4], 128  }
  0xeb   :  { %217 = vsyncadd [#allocation4], 4294967168 }
  0xec   :  { %125 = vsyncpa [#allocation3], 1 }
  0xed   :  { %126 = vsyncpa [#allocation6], 1 }
  0xee   :  { %127 = vsyncpa [#allocation4], 1 }

</bundles_post_ra>
